<compile_context>
chip_gen: v7x
topology: tpu7x:2x2x1
jax: 0.10.0
libtpu: 0.0.40
codegen_flags: <defaults>
</compile_context>

<pallas_src>
import functools
import math

import jax
import jax.numpy as jnp
from jax import lax
from jax.experimental import pallas as pl
from jax.experimental.pallas import tpu as pltpu


def _scale_norm_kernel(g_ref, x_ref, o_ref, *, scale, eps):
    # x_ref: (tile_rows, dim) VMEM tile; g_ref: (1,) scalar in SMEM.
    xf = x_ref[...].astype(jnp.float32)
    # Sum of squares along the lane dim, f32 accumulation.
    sq_sum = jnp.sum(xf * xf, axis=-1, keepdims=True)            # (tile_rows, 1)
    # 1 / max(sqrt(sq_sum) * scale, eps) == rsqrt(max(sq_sum*scale^2, eps^2))
    inv = lax.rsqrt(jnp.maximum(sq_sum * (scale * scale), eps * eps))
    # Fold g once, multiply in f32, cast once (memory-bound: extra f32 VALU
    # work is hidden under DMA; avoids double rounding for bf16 inputs).
    o_ref[...] = (xf * (g_ref[0] * inv)).astype(o_ref.dtype)


def _sublane_multiple(dtype):
    """Rows per fully-packed vreg sublane group for this dtype."""
    itemsize = jnp.dtype(dtype).itemsize
    return {4: 8, 2: 16, 1: 32}.get(itemsize, 8)


def _vmem_capacity_bytes():
    """Per-TensorCore VMEM capacity; conservative v7x fallback if unknown."""
    try:
        return int(pltpu.get_tpu_info().vmem_capacity_bytes)
    except Exception:
        return 64 << 20


def _pick_tile_rows(rows, dim, dtype, block_budget_bytes, min_steps=8):
    """Largest row tile (multiple of the dtype sublane packing) such that one
    block fits the per-block budget, while keeping >= min_steps grid steps
    when rows permit (pipeline overlap + v7x megacore)."""
    mult = _sublane_multiple(dtype)
    row_bytes = dim * jnp.dtype(dtype).itemsize
    if rows <= mult:
        return rows  # full-extent block; valid even if not a packing multiple
    tr = max(block_budget_bytes, mult * row_bytes) // max(1, row_bytes)
    # Keep several grid steps when rows permit so double-buffering overlaps.
    tr = min(tr, max(1, rows // min_steps))
    tr = max(mult, (tr // mult) * mult)
    tr = min(tr, rows)
    return rows if tr >= rows else int(tr)


def scale_norm(x, g, *, eps=1e-5, tile_rows=None):
    """Apply ScaleNorm over the last dim of x. x: (..., dim), g: scalar array (1,)."""
    orig_shape = x.shape
    dim = orig_shape[-1]
    scale = float(dim) ** -0.5

    rows = int(math.prod(orig_shape[:-1])) if len(orig_shape) > 1 else 1
    x2d = x.reshape(rows, dim)
    dtype_bytes = jnp.dtype(x.dtype).itemsize
    mult = _sublane_multiple(x.dtype)

    # Generation-aware budgets: ~16 MiB blocks on 128-MiB VMEM parts
    # (v5e/v6e), ~8 MiB blocks on v7x (64 MiB per TensorCore).
    vmem_cap = _vmem_capacity_bytes()
    four_block_budget = min(vmem_cap // 2, 64 << 20)
    block_budget = four_block_budget // 4

    # Guard: no tiling along dim, so even the minimal (mult, dim) block times
    # 4 double-buffered buffers must fit VMEM.
    # TODO(synk): for pathologically wide rows, add a dim-tiled two-pass
    # (reduce-then-scale) fallback instead of failing.
    min_block_bytes = min(rows, mult) * dim * dtype_bytes
    if 4 * min_block_bytes > max(vmem_cap - (8 << 20), 8 << 20):
        raise ValueError(
            f"ScaleNorm: dim={dim} too wide to fit 4 double-buffered blocks in "
            f"{vmem_cap >> 20} MiB VMEM without dim tiling")

    if tile_rows is None:
        tile_rows = _pick_tile_rows(rows, dim, x.dtype, block_budget)
    else:
        assert tile_rows == rows or tile_rows % mult == 0, (
            f"tile_rows must be a multiple of {mult} (dtype sublane packing) "
            "or equal to the total row count")

    # Ragged last block is handled by Pallas (OOB reads padded, OOB writes
    # dropped) -- no host-side padding or trailing slice needed.
    grid = (pl.cdiv(rows, tile_rows),)

    # 2 double-buffered input blocks + 2 output blocks, plus headroom; never
    # ask for more than (close to) physical VMEM.
    block_bytes = tile_rows * dim * dtype_bytes
    vmem_limit = max(4 * block_bytes + (4 << 20), 8 << 20)
    vmem_limit = int(min(vmem_limit, max(vmem_cap - (8 << 20), 8 << 20)))

    # TODO(synk): for dim not a multiple of 128, lane-padding the output would
    # avoid masked stores; unnecessary for realistic hidden sizes (>= 128).
    out = pl.pallas_call(
        functools.partial(_scale_norm_kernel, scale=scale, eps=eps),
        out_shape=jax.ShapeDtypeStruct((rows, dim), x.dtype),
        grid_spec=pltpu.PrefetchScalarGridSpec(
            num_scalar_prefetch=0,
            grid=grid,
            in_specs=[
                pl.BlockSpec(memory_space=pltpu.SMEM),               # g (scalar)
                pl.BlockSpec((tile_rows, dim), lambda i: (i, 0)),    # x tile
            ],
            out_specs=pl.BlockSpec((tile_rows, dim), lambda i: (i, 0)),
        ),
        compiler_params=pltpu.CompilerParams(
            dimension_semantics=("parallel",),
            vmem_limit_bytes=vmem_limit,
        ),
    )(g, x2d)

    return out.reshape(orig_shape)


def scale_norm_ref(x, g, *, eps=1e-5):
    """Pure-JAX reference matching the PyTorch module."""
    dim = x.shape[-1]
    scale = float(dim) ** -0.5
    norm = jnp.linalg.norm(x.astype(jnp.float32), axis=-1, keepdims=True) * scale
    norm = jnp.maximum(norm, eps)
    return (x / norm * g[0]).astype(x.dtype)


if __name__ == "__main__":
    key = jax.random.PRNGKey(0)

    # Deterministic parameter init: g = ones(1), as in nn.Parameter(torch.ones(1)).
    g = jnp.ones((1,), dtype=jnp.float32)

    # Case 1: rows divisible by the tile (batch=2, seq=8, hidden=32 -> 16 rows).
    batch, seq, hidden = 2, 8, 32
    x = jax.random.normal(key, (batch, seq, hidden), dtype=jnp.float32)
    out = jax.block_until_ready(scale_norm(x, g))
    ref = scale_norm_ref(x, g)
    assert out.shape == x.shape
    assert jnp.allclose(out, ref, atol=1e-5, rtol=1e-5), "mismatch vs reference (even rows)"

    # Case 2: ragged last grid block (15 rows, tile of 8) exercises the
    # no-pad / OOB-masked path.
    key2 = jax.random.PRNGKey(0)
    x2 = jax.random.normal(key2, (3, 5, hidden), dtype=jnp.float32)
    out2 = jax.block_until_ready(scale_norm(x2, g, tile_rows=8))
    ref2 = scale_norm_ref(x2, g)
    assert out2.shape == x2.shape
    assert jnp.allclose(out2, ref2, atol=1e-5, rtol=1e-5), "mismatch vs reference (ragged rows)"

    print("KERNEL_OK")
</pallas_src>

<mosaic_0001>
module attributes {stable_mosaic.version = 11 : i64} {
  func.func @_scale_norm_kernel(%arg0: i32, %arg1: memref<1xf32, #tpu.memory_space<smem>>, %arg2: memref<8x32xf32, #tpu.memory_space<vmem>>, %arg3: memref<8x32xf32, #tpu.memory_space<vmem>>) attributes {dimension_semantics = [#tpu.dimension_semantics<parallel>], iteration_bounds = array<i64: 2>, scalar_prefetch = 0 : i64, scratch_operands = 0 : i64, tpu.core_type = #tpu.core_type<tc>, window_params = [{transform_indices = @transform_0, window_bounds = array<i64: 1>}, {transform_indices = @transform_1, window_bounds = array<i64: 8, 32>}, {transform_indices = @transform_2, window_bounds = array<i64: 8, 32>}]} {
    %c0 = arith.constant 0 : index
    %c0_0 = arith.constant 0 : index
    %0 = vector.load %arg2[%c0, %c0_0] : memref<8x32xf32, #tpu.memory_space<vmem>>, vector<8x32xf32>
    %1 = arith.mulf %0, %0 : vector<8x32xf32>
    %cst = arith.constant dense<0.000000e+00> : vector<8xf32>
    %2 = vector.multi_reduction <add>, %1, %cst [1] : vector<8x32xf32> to vector<8xf32>
    %3 = vector.shape_cast %2 : vector<8xf32> to vector<8x1xf32>
    %cst_1 = arith.constant 3.125000e-02 : f32
    %4 = vector.broadcast %cst_1 : f32 to vector<8x1xf32>
    %5 = arith.mulf %3, %4 : vector<8x1xf32>
    %cst_2 = arith.constant 1.000000e-10 : f32
    %6 = vector.broadcast %cst_2 : f32 to vector<8x1xf32>
    %7 = arith.maximumf %5, %6 : vector<8x1xf32>
    %8 = math.rsqrt %7 : vector<8x1xf32>
    %c0_3 = arith.constant 0 : index
    %9 = memref.load %arg1[%c0_3] : memref<1xf32, #tpu.memory_space<smem>>
    %10 = vector.broadcast %9 : f32 to vector<8x1xf32>
    %11 = arith.mulf %10, %8 : vector<8x1xf32>
    %12 = vector.broadcast %11 : vector<8x1xf32> to vector<8x32xf32>
    %13 = arith.mulf %0, %12 : vector<8x32xf32>
    %c0_4 = arith.constant 0 : index
    %c0_5 = arith.constant 0 : index
    %14 = vector.load %arg3[%c0_4, %c0_5] : memref<8x32xf32, #tpu.memory_space<vmem>>, vector<8x32xf32>
    tpu.vector_store %arg3[%c0_4, %c0_5], %13 {strides = array<i32>} : memref<8x32xf32, #tpu.memory_space<vmem>>, vector<8x32xf32>,
    return
  }
  func.func @transform_0(%arg0: i32) -> i32 {
    %c0_i32 = arith.constant 0 : i32
    %c0_i32_0 = arith.constant 0 : i32
    return %c0_i32 : i32
  }
  func.func @transform_1(%arg0: i32) -> (i32, i32) {
    %c0_i32 = arith.constant 0 : i32
    %c0_i32_0 = arith.constant 0 : i32
    return %arg0, %c0_i32 : i32, i32
  }
  func.func @transform_2(%arg0: i32) -> (i32, i32) {
    %c0_i32 = arith.constant 0 : i32
    %c0_i32_0 = arith.constant 0 : i32
    return %arg0, %c0_i32 : i32, i32
  }
}

</mosaic_0001>

<bundles_post_ra>
// kernel: tpu_custom_call.1
= control target key start
LH: loop header
LB: loop body
LE: loop exit
PB: predicated region body
PF: predicated region fallthrough
CT: control target
= control target key end

     0   :  { %s599_s0 = inlined_call_operand.<no memory space> [shape: f32[1], index: 0, kind: input, shape index: {}]   ;;  %s600_s1 = inlined_call_operand.hbm [shape: f32[16,32], index: 1, kind: input, shape index: {}]   ;;  %s601_s2 = inlined_call_operand.hbm [shape: f32[16,32], index: 2, kind: output, shape index: {}]  }
   0x1   :  { %7 = sst [smem:[#allocation2]] %s599_s0 }
   0x2   :  { %8 = vsyncpa [#allocation4], 0 }
   0x3   :  { %10 = vsyncpa [#allocation4 + $0x1], 0 }
   0x4   :  { %11 = vsyncpa [#allocation5], 0 }
   0x5   :  { %13 = vsyncpa [#allocation5 + $0x1], 0  ;;  %s436_s11 = smov 0   ;;  %s438_s12 = smov 0  }
   0x6   :  { %s440_s13 = smov 0   ;;  %s442_s14 = smov 0  }
   0x7 LB: > { %s457_s0 = sadd.s32 4294967295, %s414_s14   ;;  %s258_s15 = sadd.s32 4294967294, %s414_s14   ;;  %s414_s14 = sphi %s442_s14, %s616_s14   ;;  %s410_s13 = sphi %s440_s13, %s615_s13   ;;  %s406_s12 = sphi %s438_s12, %s614_s12   ;;  %s402_s11 = sphi %s436_s11, %s613_s11  }
   0x8   : > { %s461_s16 = sadd.s32 1, %s414_s14   ;;  %s47_s17 = sadd.s32 1, %s410_s13 }
   0x9   : > { %s44_s18 = ssub.s32 %s414_s14, %s461_s16  ;;  %p54_p0 = scmp.ne.s32.totalorder %s410_s13, %s406_s12 }
   0xa   : > { %p45_p1 = scmp.eq.s32.totalorder %s44_s18, 0  ;;  %p55_p2 = scmp.eq.s32.totalorder %s414_s14, 0 }
   0xb   : > { %p60_p3 = scmp.ne.s32.totalorder %s406_s12, %s402_s11  ;;  %p61_p4 = scmp.eq.s32.totalorder %s457_s0, 0 }
   0xc   : > { %s473_s19 = scalar_select %p45_p1, %s410_s13, %s47_s17  }
   0xd   : > { %p475_p5 = por %p55_p2, %p54_p0  ;;  %p479_p6 = por %p61_p4, %p60_p3 }
   0xe   : > { %p84_p7 = scmp.eq.s32.totalorder %s457_s0, 1  ;;  %p90_p8 = scmp.eq.s32.totalorder %s258_s15, 1 }
   0xf   : > { %p282_p10 = scmp.lt.s32.totalorder %s414_s14, 2  ;;  %s113_s24 = sand.u32 1, %s410_s13  }
  0x10   : > { %p486_p11 = por %p84_p7, %p54_p0  ;;  %p490_p12 = por %p90_p8, %p60_p3 }
  0x11   : > { %s262_s25 = sshll.u32 %s414_s14, 7  ;;  %s261_s26 = sshll.u32 %s113_s24, 3 }
  0x12   : > { %s605_s22 = scalar_select %p486_p11, 1, 0 }
  0x13   : > { %s606_s23 = scalar_select %p490_p12, 1, 0 }
  0x14   : > { %s499_s29 = scalar_lea.hbm %s600_s1, %s262_s25  ;;  %s117_s30 = scalar_lea.vmem [#allocation3], %s261_s26 }
  0x15   : > { %s124_s3 = sshll.u32 %s117_s30, 4  ;;  %p503_p13 = pnand %p282_p10, %p475_p5  ;;  %s507_s3 = int_to_ptr.vmem [resolvable:$true] %s124_s3 }
  0x16   : > { %s114_s5 = scalar_lea.sflag [#allocation4], %s113_s24  ;;  %s318_s6 = scalar_lea.hbm %s499_s29, 128 }
  0x17   : > { %p319_p2 = scmp.ne.s32.totalorder %s499_s29, %s318_s6  ;;  %p320_p3 = pneg %p503_p13 }
  0x18   : > { %s323_s9 = scalar_lea.hbm %s600_s1, 256  ;;  %p324_p5 = scmp.lt.u32.totalorder %s499_s29, %s600_s1 }
  0x19   : > { %p321_p4 = pnand %p320_p3, %p319_p2  ;;  %p325_p8 = scmp.lt.u32.totalorder %s323_s9, %s318_s6 }
  0x1a   : > { %p327_p9 = scmp.lt.u32.totalorder %s318_s6, %s499_s29 }
  0x1b   : > { %p322_p7 = pneg %p321_p4  ;;  %p326_p10 = por %p325_p8, %p324_p5 }
  0x1d   : > { %p328_p0 = por %p327_p9, %p326_p10 }
  0x1f   : > { %p329_p1 = pnand %p328_p0, %p322_p7 }
  0x21   : > { %332 = shalt.err (!%p329_p1)
}
  0x22   : > { %s333_s17 = scalar_lea.vmem %s507_s3, 128  ;;  %s416_s18 = smov [#allocation3]  }
  0x23   : > { %p334_p2 = scmp.ne.s32.totalorder %s507_s3, %s333_s17  ;;  %s338_s20 = sshll.u32 %s416_s18, 4  ;;  %s339_s20 = int_to_ptr.vmem [resolvable:$false] %s338_s20 }
  0x24   : > { %s340_s24 = scalar_lea.vmem %s339_s20, 256  ;;  %p341_p11 = scmp.lt.s32.totalorder %s507_s3, %s339_s20 }
  0x25   : > { %p336_p4 = pnand %p334_p2, %p320_p3  ;;  %p342_p5 = scmp.lt.s32.totalorder %s340_s24, %s333_s17 }
  0x27   : > { %p337_p12 = pneg %p336_p4  ;;  %p343_p8 = por %p342_p5, %p341_p11 }
  0x29   : > { %p344_p9 = pnand %p343_p8, %p337_p12 }
  0x2b   : > { %347 = shalt.err (!%p344_p9)
}
  0x2c   : > { %277 = dma.hbm_to_vmem [thread:$0]  (!%p503_p13), %s499_s29, 128, %s507_s3, %s114_s5  }
  0x2d   : > { %p608_p0 = scmp.lt.s32.totalorder %s414_s14, 3  ;;  %p609_p1 = scmp.ge.s32.totalorder %s414_s14, 1 }
  0x2f   : > { %p130_p3 = pnand %p609_p1, %p608_p0 }
  0x30   : > { %s541_s25 = sand.u32 (!%p130_p3), 1, %s406_s12  }
  0x31   : > { %133 = sbr.rel (%p130_p3) target bundleno = 236 (0xec), region = 28  ;;  %s264_s26 = sshll.u32 (!%p130_p3), %s541_s25, 3 }
  0x32   : > { %s136_s27 = scalar_lea.sflag (!%p130_p3), [#allocation4], %s541_s25  ;;  %s139_s28 = scalar_lea.vmem (!%p130_p3), [#allocation3], %s264_s26 }
  0x38   : > { %393 = dma.done.wait (%p479_p6), %s136_s27, 128  }
  0x39   : > { %395 = vsyncadd (%p479_p6), %s136_s27, 4294967168  ;;  %v160_v0 = vld [vmem:[%s139_s28] sm:$0xff]  ;;  %vm162_vm0 = vcmask 261120   ;;  %s169_s29 = sld [smem:[#allocation2]]  ;;  %s267_s30 = sshll.u32 %s457_s0, 7 }
  0x3a   : > { %v161_v1 = vmul.f32 %v160_v0, %v160_v0  ;;  %s159_s3 = scalar_lea.vmem [#allocation6], %s264_s26  ;;  %s554_s6 = scalar_lea.hbm %s601_s2, %s267_s30 }
  0x3b   : > { %s188_s21 = sshll.u32 %s159_s3, 4  ;;  %s175_s7 = scalar_lea.sflag [#allocation5], %s541_s25  ;;  %s556_s21 = int_to_ptr.vmem [resolvable:$true] %s188_s21 }
  0x3c   : > { %v163_v2 = vsel %vm162_vm0, %v161_v1, 0.0  ;;  %s348_s8 = scalar_lea.vmem %s556_s21, 128  ;;  %p610_p11 = scmp.ne.s32.totalorder %s605_s22, 0 }
  0x3d   : > { %164 = vadd.xlane.f32.xlu0 %v163_v2  ;;  %p349_p6 = scmp.ne.s32.totalorder %s556_s21, %s348_s8  ;;  %s417_s0 = smov [#allocation6]  }
  0x3e   : > { %s352_s9 = sshll.u32 %s417_s0, 4  ;;  %s353_s9 = int_to_ptr.vmem [resolvable:$false] %s352_s9 }
  0x3f   : > { %v170_v6 = vstv %s169_s29  ;;  %p350_p12 = pnand %p349_p6, %p610_p11  ;;  %s354_s10 = scalar_lea.vmem %s353_s9, 256 }
  0x40   : > { %p355_p7 = scmp.lt.s32.totalorder %s556_s21, %s353_s9  ;;  %p356_p10 = scmp.lt.s32.totalorder %s354_s10, %s348_s8 }
  0x41   : > { %p351_p13 = pneg %p350_p12 }
  0x42   : > { %p357_p2 = por %p356_p10, %p355_p7 }
  0x44   : > { %p358_p4 = pnand %p357_p2, %p351_p13 }
  0xca   : > { %v165_v3 = vpop.xlane.xlu0 %164 }
  0xcb   : > { %v166_v4 = vmul.f32 0.03125, %v165_v3 }
  0xcd   : > { %v167_v5 = vmax.f32 %v166_v4, 1e-10 }
  0xcf   : > { %316 = vrsqrt.f32 %v167_v5 }
  0xd9   : > { %v317_v7 = vpop.eup %316 }
  0xda   : > { %v171_v8 = vmul.f32 %v317_v7, %v170_v6 }
  0xdc   : > { %v172_v9 = vmul.f32 %v171_v8, %v160_v0 }
  0xde   : > { %173 = vst.msk [vmem:[%s159_s3] sm:$0xff] %vm162_vm0, %v172_v9 }
  0xdf   : > { %361 = shalt.err (!%p358_p4)
}
  0xe0   : > { %s362_s15 = scalar_lea.hbm %s554_s6, 128  ;;  %s366_s20 = scalar_lea.hbm %s601_s2, 256 }
  0xe1   : > { %p363_p5 = scmp.ne.s32.totalorder %s554_s6, %s362_s15  ;;  %p367_p0 = scmp.lt.u32.totalorder %s554_s6, %s601_s2 }
  0xe2   : > { %p368_p1 = scmp.lt.u32.totalorder %s366_s20, %s362_s15  ;;  %p370_p6 = scmp.lt.u32.totalorder %s362_s15, %s554_s6 }
  0xe3   : > { %p364_p8 = pnand %p363_p5, %p610_p11 }
  0xe4   : > { %p369_p3 = por %p368_p1, %p367_p0 }
  0xe5   : > { %p365_p9 = pneg %p364_p8 }
  0xe6   : > { %p371_p12 = por %p370_p6, %p369_p3 }
  0xe8   : > { %p372_p13 = pnand %p371_p12, %p365_p9 }
  0xea   : > { %375 = shalt.err (!%p372_p13)
}
  0xeb   : > { %272 = dma.vmem_to_hbm [thread:$0]  (%p610_p11), %s556_s21, 128, %s554_s6, %s175_s7  }
  0xec PF: > { %s200_s26 = sand.u32 1, %s402_s11   ;;  %p611_p7 = scmp.ne.s32.totalorder %s606_s23, 0 }
  0xed   : > { %p612_p10 = scmp.ge.s32.totalorder %s414_s14, 2  ;;  %s201_s27 = scalar_lea.sflag [#allocation5], %s200_s26 }
  0xef   : > { %p279_p2 = pnand %p612_p10, %p611_p7 }
  0xf1   : > { %397 = dma.done.wait (!%p279_p2), %s201_s27, 128  }
  0xf2   : > { %399 = vsyncadd (!%p279_p2), %s201_s27, 4294967168  ;;  %p16_p4 = scmp.ge.s32.totalorder %s461_s16, 4   ;;  %s613_s11 = smov %s406_s12 }
  0xf3   : > { %s614_s12 = smov %s410_s13  ;;  %s615_s13 = smov %s473_s19 }
  0xf4   : > { %s616_s14 = smov %s461_s16  ;;  %18 = sbr.rel (!%p16_p4) target bundleno = 7 (0x7), region = 73 }
  0xfb   :  { %206 = vsyncpa [#allocation4], 1 }
  0xfc   :  { %208 = vsyncpa [#allocation4 + $0x1], 1 }
  0xfd   :  { %209 = vsyncpa [#allocation5], 1 }
  0xfe   :  { %211 = vsyncpa [#allocation5 + $0x1], 1 }

</bundles_post_ra>
